<compile_context>
chip_gen: v7x
topology: tpu7x:2x2x1
jax: 0.10.0
libtpu: 0.0.40
codegen_flags: <defaults>
</compile_context>

<pallas_src>
import functools

import jax
import jax.numpy as jnp
from jax.experimental import pallas as pl
from jax.experimental.pallas import tpu as pltpu

EPS = 1e-5  # PyTorch nn.LayerNorm default


def _round_up(x, m):
    return ((x + m - 1) // m) * m


def prenorm_kernel(x_ref, gamma_ref, beta_ref, w_ref, b_ref, o_ref, *, d_valid):
    # x_ref: (tm, Dp) input dtype
    # gamma_ref/beta_ref: (1, Dp) f32     w_ref: (Dp, Dp_out) bf16
    # b_ref: (1, Dp_out) f32              o_ref: (tm, Dp_out) input dtype
    x = x_ref[...].astype(jnp.float32)
    inv_d = jnp.float32(1.0 / d_valid)

    # LayerNorm over the last dim (biased variance, like PyTorch).  Padded
    # lanes of x are zero so they don't affect the sum; they are masked out of
    # the centered value so the variance is exact.
    mean = jnp.sum(x, axis=-1, keepdims=True) * inv_d
    if d_valid == x.shape[-1]:
        xc = x - mean
    else:
        col = jax.lax.broadcasted_iota(jnp.int32, x.shape, 1)
        xc = jnp.where(col < d_valid, x - mean, 0.0)
    var = jnp.sum(xc * xc, axis=-1, keepdims=True) * inv_d
    inv = jax.lax.rsqrt(var + EPS)

    # gamma/beta are already f32; padded gamma/beta lanes are zero, so the
    # padded columns of y are zero and contribute nothing to the matmul.
    y = xc * inv * gamma_ref[...] + beta_ref[...]

    # fn = Linear: bf16 x bf16 on the MXU, f32 accumulation, bias added on the
    # f32 accumulator before the final downcast.
    out = jnp.dot(y.astype(w_ref.dtype), w_ref[...],
                  preferred_element_type=jnp.float32)
    o_ref[...] = (out + b_ref[...]).astype(o_ref.dtype)


def prenorm(x, gamma, beta, weight, bias, *, tm=256):
    """PreNorm(dim, Linear(dim, dim_out)) forward.

    x:      (B, N, D)
    gamma:  (D,)        LayerNorm weight
    beta:   (D,)        LayerNorm bias
    weight: (D_out, D)  PyTorch nn.Linear weight layout
    bias:   (D_out,)
    returns (B, N, D_out)
    """
    B, N, D = x.shape
    D_out, D_in = weight.shape
    assert D_in == D

    M = B * N
    tm = min(tm, _round_up(M, 8))       # don't over-pad tiny inputs
    Mp = _round_up(M, tm)
    Dp = _round_up(D, 128)              # lane-dense LN / MXU K dimension
    Dp_out = _round_up(D_out, 128)      # lane-dense output stores / MXU N

    x2 = x.reshape(M, D)
    if (Mp, Dp) != (M, D):
        x2 = jnp.pad(x2, ((0, Mp - M), (0, Dp - D)))

    # Grid-invariant operands, pre-cast once in the wrapper (no in-kernel casts).
    gamma2 = jnp.pad(gamma.astype(jnp.float32), (0, Dp - D)).reshape(1, Dp)
    beta2 = jnp.pad(beta.astype(jnp.float32), (0, Dp - D)).reshape(1, Dp)
    w2 = jnp.pad(weight.T, ((0, Dp - D), (0, Dp_out - D_out))).astype(jnp.bfloat16)
    b2 = jnp.pad(bias.astype(jnp.float32), (0, Dp_out - D_out)).reshape(1, Dp_out)

    kernel = functools.partial(prenorm_kernel, d_valid=D)

    out = pl.pallas_call(
        kernel,
        out_shape=jax.ShapeDtypeStruct((Mp, Dp_out), x.dtype),
        grid_spec=pltpu.PrefetchScalarGridSpec(
            num_scalar_prefetch=0,
            grid=(Mp // tm,),
            in_specs=[
                pl.BlockSpec((tm, Dp), lambda i: (i, 0)),
                pl.BlockSpec((1, Dp), lambda i: (0, 0)),
                pl.BlockSpec((1, Dp), lambda i: (0, 0)),
                pl.BlockSpec((Dp, Dp_out), lambda i: (0, 0)),
                pl.BlockSpec((1, Dp_out), lambda i: (0, 0)),
            ],
            out_specs=pl.BlockSpec((tm, Dp_out), lambda i: (i, 0)),
        ),
        compiler_params=pltpu.CompilerParams(
            dimension_semantics=("parallel",),
            vmem_limit_bytes=64 * 1024 * 1024,
        ),
    )(x2, gamma2, beta2, w2, b2)

    return out[:M, :D_out].reshape(B, N, D_out)


def reference(x, gamma, beta, weight, bias):
    """Pure f32 LayerNorm + Linear (PyTorch semantics)."""
    x32 = x.astype(jnp.float32)
    mean = jnp.mean(x32, axis=-1, keepdims=True)
    var = jnp.mean((x32 - mean) ** 2, axis=-1, keepdims=True)
    y = (x32 - mean) * jax.lax.rsqrt(var + EPS) * gamma + beta
    return (y @ weight.T.astype(jnp.float32) + bias).astype(x.dtype)


if __name__ == "__main__":
    B, N, D = 2, 8, 32  # batch, seq, hidden (the `dim` passed to PreNorm)
    D_out = D           # fn = nn.Linear(dim, dim)

    key = jax.random.PRNGKey(0)
    kx, kw, kb = jax.random.split(key, 3)

    x = jax.random.normal(kx, (B, N, D), dtype=jnp.float32)

    # nn.LayerNorm(dim) default init: weight=1, bias=0
    gamma = jnp.ones((D,), jnp.float32)
    beta = jnp.zeros((D,), jnp.float32)

    # fn = Linear(D, D): weight stored in PyTorch layout (D_out, D_in)
    limit = (6.0 / (D + D_out)) ** 0.5
    weight = jax.random.uniform(kw, (D_out, D), jnp.float32, -limit, limit)
    bias = jax.random.uniform(kb, (D_out,), jnp.float32, -limit, limit)

    out = prenorm(x, gamma, beta, weight, bias)
    out = jax.block_until_ready(out)

    ref = reference(x, gamma, beta, weight, bias)
    assert out.shape == (B, N, D_out), out.shape
    # Matmul runs in bf16 on the MXU (f32 accumulation), so compare with a
    # tolerance that covers bf16 mantissa error against the pure-f32 reference.
    max_err = float(jnp.max(jnp.abs(out.astype(jnp.float32) - ref.astype(jnp.float32))))
    assert jnp.allclose(out, ref, atol=2e-2, rtol=2e-2), max_err

    print("KERNEL_OK")
</pallas_src>

<mosaic_0001>
module attributes {stable_mosaic.version = 11 : i64} {
  func.func @prenorm_kernel(%arg0: i32, %arg1: memref<16x128xf32, #tpu.memory_space<vmem>>, %arg2: memref<1x128xf32, #tpu.memory_space<vmem>>, %arg3: memref<1x128xf32, #tpu.memory_space<vmem>>, %arg4: memref<128x128xbf16, #tpu.memory_space<vmem>>, %arg5: memref<1x128xf32, #tpu.memory_space<vmem>>, %arg6: memref<16x128xf32, #tpu.memory_space<vmem>>) attributes {dimension_semantics = [#tpu.dimension_semantics<parallel>], iteration_bounds = array<i64: 1>, scalar_prefetch = 0 : i64, scratch_operands = 0 : i64, tpu.core_type = #tpu.core_type<tc>, window_params = [{transform_indices = @transform_0, window_bounds = array<i64: 16, 128>}, {pipeline_mode = #tpu.pipeline_mode<synchronous>, transform_indices = @transform_1, window_bounds = array<i64: 1, 128>}, {pipeline_mode = #tpu.pipeline_mode<synchronous>, transform_indices = @transform_2, window_bounds = array<i64: 1, 128>}, {pipeline_mode = #tpu.pipeline_mode<synchronous>, transform_indices = @transform_3, window_bounds = array<i64: 128, 128>}, {pipeline_mode = #tpu.pipeline_mode<synchronous>, transform_indices = @transform_4, window_bounds = array<i64: 1, 128>}, {transform_indices = @transform_5, window_bounds = array<i64: 16, 128>}]} {
    %c0 = arith.constant 0 : index
    %c0_0 = arith.constant 0 : index
    %0 = vector.load %arg1[%c0, %c0_0] : memref<16x128xf32, #tpu.memory_space<vmem>>, vector<16x128xf32>
    %cst = arith.constant dense<0.000000e+00> : vector<16xf32>
    %1 = vector.multi_reduction <add>, %0, %cst [1] : vector<16x128xf32> to vector<16xf32>
    %2 = vector.shape_cast %1 : vector<16xf32> to vector<16x1xf32>
    %cst_1 = arith.constant 3.125000e-02 : f32
    %3 = vector.broadcast %cst_1 : f32 to vector<16x1xf32>
    %4 = arith.mulf %2, %3 : vector<16x1xf32>
    %5 = tpu.iota {dimensions = array<i32: 1>} : vector<16x128xi32>
    %c32_i32 = arith.constant 32 : i32
    %6 = vector.broadcast %c32_i32 : i32 to vector<16x128xi32>
    %7 = arith.cmpi slt, %5, %6 : vector<16x128xi32>
    %8 = vector.broadcast %4 : vector<16x1xf32> to vector<16x128xf32>
    %9 = arith.subf %0, %8 : vector<16x128xf32>
    %cst_2 = arith.constant 0.000000e+00 : f32
    %10 = vector.broadcast %cst_2 : f32 to vector<16x128xf32>
    %11 = arith.select %7, %9, %10 : vector<16x128xi1>, vector<16x128xf32>
    %12 = arith.mulf %11, %11 : vector<16x128xf32>
    %cst_3 = arith.constant dense<0.000000e+00> : vector<16xf32>
    %13 = vector.multi_reduction <add>, %12, %cst_3 [1] : vector<16x128xf32> to vector<16xf32>
    %14 = vector.shape_cast %13 : vector<16xf32> to vector<16x1xf32>
    %cst_4 = arith.constant 3.125000e-02 : f32
    %15 = vector.broadcast %cst_4 : f32 to vector<16x1xf32>
    %16 = arith.mulf %14, %15 : vector<16x1xf32>
    %cst_5 = arith.constant 9.99999974E-6 : f32
    %17 = vector.broadcast %cst_5 : f32 to vector<16x1xf32>
    %18 = arith.addf %16, %17 : vector<16x1xf32>
    %19 = math.rsqrt %18 : vector<16x1xf32>
    %20 = vector.broadcast %19 : vector<16x1xf32> to vector<16x128xf32>
    %21 = arith.mulf %11, %20 : vector<16x128xf32>
    %c0_6 = arith.constant 0 : index
    %c0_7 = arith.constant 0 : index
    %22 = vector.load %arg2[%c0_6, %c0_7] : memref<1x128xf32, #tpu.memory_space<vmem>>, vector<1x128xf32>
    %23 = vector.broadcast %22 : vector<1x128xf32> to vector<16x128xf32>
    %24 = arith.mulf %21, %23 : vector<16x128xf32>
    %c0_8 = arith.constant 0 : index
    %c0_9 = arith.constant 0 : index
    %25 = vector.load %arg3[%c0_8, %c0_9] : memref<1x128xf32, #tpu.memory_space<vmem>>, vector<1x128xf32>
    %26 = vector.broadcast %25 : vector<1x128xf32> to vector<16x128xf32>
    %27 = arith.addf %24, %26 : vector<16x128xf32>
    %28 = arith.truncf %27 : vector<16x128xf32> to vector<16x128xbf16>
    %c0_10 = arith.constant 0 : index
    %c0_11 = arith.constant 0 : index
    %29 = vector.load %arg4[%c0_10, %c0_11] : memref<128x128xbf16, #tpu.memory_space<vmem>>, vector<128x128xbf16>
    %cst_12 = arith.constant dense<0.000000e+00> : vector<16x128xf32>
    %30 = tpu.matmul %28, %29, %cst_12 {dimension_numbers = #tpu.dot_dimension_numbers<[1], [0], [0], [1], [0, 0, 1, 1], [], []>} : vector<16x128xbf16>, vector<128x128xbf16>, vector<16x128xf32> -> vector<16x128xf32>
    %c0_13 = arith.constant 0 : index
    %c0_14 = arith.constant 0 : index
    %31 = vector.load %arg5[%c0_13, %c0_14] : memref<1x128xf32, #tpu.memory_space<vmem>>, vector<1x128xf32>
    %32 = vector.broadcast %31 : vector<1x128xf32> to vector<16x128xf32>
    %33 = arith.addf %30, %32 : vector<16x128xf32>
    %c0_15 = arith.constant 0 : index
    %c0_16 = arith.constant 0 : index
    %34 = vector.load %arg6[%c0_15, %c0_16] : memref<16x128xf32, #tpu.memory_space<vmem>>, vector<16x128xf32>
    tpu.vector_store %arg6[%c0_15, %c0_16], %33 {strides = array<i32>} : memref<16x128xf32, #tpu.memory_space<vmem>>, vector<16x128xf32>,
    return
  }
  func.func @transform_0(%arg0: i32) -> (i32, i32) {
    %c0_i32 = arith.constant 0 : i32
    %c0_i32_0 = arith.constant 0 : i32
    return %arg0, %c0_i32 : i32, i32
  }
  func.func @transform_1(%arg0: i32) -> (i32, i32) {
    %c0_i32 = arith.constant 0 : i32
    %c0_i32_0 = arith.constant 0 : i32
    %c0_i32_1 = arith.constant 0 : i32
    return %c0_i32, %c0_i32_0 : i32, i32
  }
  func.func @transform_2(%arg0: i32) -> (i32, i32) {
    %c0_i32 = arith.constant 0 : i32
    %c0_i32_0 = arith.constant 0 : i32
    %c0_i32_1 = arith.constant 0 : i32
    return %c0_i32, %c0_i32_0 : i32, i32
  }
  func.func @transform_3(%arg0: i32) -> (i32, i32) {
    %c0_i32 = arith.constant 0 : i32
    %c0_i32_0 = arith.constant 0 : i32
    %c0_i32_1 = arith.constant 0 : i32
    return %c0_i32, %c0_i32_0 : i32, i32
  }
  func.func @transform_4(%arg0: i32) -> (i32, i32) {
    %c0_i32 = arith.constant 0 : i32
    %c0_i32_0 = arith.constant 0 : i32
    %c0_i32_1 = arith.constant 0 : i32
    return %c0_i32, %c0_i32_0 : i32, i32
  }
  func.func @transform_5(%arg0: i32) -> (i32, i32) {
    %c0_i32 = arith.constant 0 : i32
    %c0_i32_0 = arith.constant 0 : i32
    return %arg0, %c0_i32 : i32, i32
  }
}

</mosaic_0001>

<bundles_post_ra>
// kernel: tpu_custom_call.1
= control target key start
LH: loop header
LB: loop body
LE: loop exit
PB: predicated region body
PF: predicated region fallthrough
CT: control target
= control target key end

     0   :  { %10 = vsyncpa [#allocation3], 0  ;;  %s596_s0 = inlined_call_operand.hbm [shape: f32[16,128], index: 0, kind: input, shape index: {}]   ;;  %s597_s1 = inlined_call_operand.hbm [shape: f32[1,128], index: 1, kind: input, shape index: {}]   ;;  %s598_s2 = inlined_call_operand.hbm [shape: f32[1,128], index: 2, kind: input, shape index: {}]   ;;  %s599_s3 = inlined_call_operand.hbm [shape: bf16[128,128], index: 3, kind: input, shape index: {}]   ;;  %s600_s4 = inlined_call_operand.hbm [shape: f32[1,128], index: 4, kind: input, shape index: {}]   ;;  %s601_s5 = inlined_call_operand.hbm [shape: f32[16,128], index: 5, kind: output, shape index: {}]  }
   0x1   :  { %11 = vsyncpa [#allocation6], 0 }
   0x2   :  { %12 = vsyncpa [#allocation9], 0 }
   0x3   :  { %13 = vsyncpa [#allocation4], 0  ;;  %s469_s18 = smov [#allocation5]   ;;  %s470_s20 = smov [#allocation8]  }
   0x4   :  { %s32_s19 = sshll.u32 %s469_s18, 4  ;;  %s51_s21 = sshll.u32 %s470_s20, 4  ;;  %s33_s19 = int_to_ptr.vmem [resolvable:$true] %s32_s19  ;;  %s511_s21 = int_to_ptr.vmem [resolvable:$true] %s51_s21 }
   0x5   :  { %s329_s24 = scalar_lea.hbm %s597_s1, 16 }
   0x6   :  { %p330_p0 = scmp.ne.s32.totalorder %s597_s1, %s329_s24  ;;  %p333_p1 = scmp.lt.u32.totalorder %s329_s24, %s597_s1 }
   0x8   :  { %p335_p2 = pnand %p333_p1, %p330_p0 }
   0xa   :  { %338 = shalt.err (!%p335_p2)
}
   0xb   :  { %s339_s29 = scalar_lea.vmem %s33_s19, 16  ;;  %s343_s30 = scalar_lea.vmem %s33_s19, 32 }
   0xc   :  { %p340_p3 = scmp.ne.s32.totalorder %s33_s19, %s339_s29  ;;  %p344_p4 = scmp.lt.s32.totalorder %s33_s19, %s33_s19 }
   0xd   :  { %p345_p5 = scmp.lt.s32.totalorder %s343_s30, %s339_s29 }
   0xf   :  { %p346_p6 = por %p345_p5, %p344_p4 }
  0x11   :  { %p347_p7 = pnand %p346_p6, %p340_p3 }
  0x13   :  { %350 = shalt.err (!%p347_p7)
}
  0x14   :  { %35 = dma.hbm_to_vmem [thread:$0]  %s597_s1, 16, %s33_s19, [#allocation6]  }
  0x15   :  { %s351_s10 = scalar_lea.hbm %s599_s3, 1024 }
  0x16   :  { %p352_p8 = scmp.ne.s32.totalorder %s599_s3, %s351_s10  ;;  %p355_p9 = scmp.lt.u32.totalorder %s351_s10, %s599_s3 }
  0x18   :  { %p357_p10 = pnand %p355_p9, %p352_p8 }
  0x1a   :  { %360 = shalt.err (!%p357_p10)
}
  0x1b   :  { %s361_s15 = scalar_lea.vmem %s511_s21, 1024  ;;  %p366_p12 = scmp.lt.s32.totalorder %s511_s21, %s511_s21 }
  0x1c   :  { %p362_p11 = scmp.ne.s32.totalorder %s511_s21, %s361_s15  ;;  %p367_p13 = scmp.lt.s32.totalorder %s361_s15, %s361_s15 }
  0x1e   :  { %p368_p0 = por %p367_p13, %p366_p12 }
  0x20   :  { %p369_p1 = pnand %p368_p0, %p362_p11 }
  0x22   :  { %372 = shalt.err (!%p369_p1)
}
  0x23   :  { %s471_s1 = smov 64   ;;  %s472_s16 = smov 4  }
  0x24   :  { %57 = dma.hbm_to_vmem [thread:$0]  %s599_s3, 1024, %s511_s21, [#allocation9], %s471_s1, %s471_s1, %s472_s16  }
  0x25   :  { %s473_s19 = smov [#allocation2]   ;;  %s373_s24 = scalar_lea.hbm %s596_s0, 256 }
  0x26   :  { %s19_s20 = sshll.u32 %s473_s19, 4  ;;  %p374_p2 = scmp.ne.s32.totalorder %s596_s0, %s373_s24  ;;  %s20_s20 = int_to_ptr.vmem [resolvable:$true] %s19_s20 }
  0x27   :  { %p377_p3 = scmp.lt.u32.totalorder %s373_s24, %s596_s0 }
  0x29   :  { %p379_p4 = pnand %p377_p3, %p374_p2 }
  0x2b   :  { %382 = shalt.err (!%p379_p4)
}
  0x2c   :  { %s383_s29 = scalar_lea.vmem %s20_s20, 256  ;;  %p388_p6 = scmp.lt.s32.totalorder %s20_s20, %s20_s20 }
  0x2d   :  { %p384_p5 = scmp.ne.s32.totalorder %s20_s20, %s383_s29  ;;  %p389_p7 = scmp.lt.s32.totalorder %s383_s29, %s383_s29 }
  0x2f   :  { %p390_p8 = por %p389_p7, %p388_p6 }
  0x31   :  { %p391_p9 = pnand %p390_p8, %p384_p5 }
  0x33   :  { %394 = shalt.err (!%p391_p9)
}
  0x34   :  { %s474_s3 = smov 128   ;;  %s475_s21 = smov 8  }
  0x35   :  { %25 = dma.hbm_to_vmem [thread:$0]  %s596_s0, 256, %s20_s20, [#allocation3], %s474_s3, %s474_s3, %s475_s21  }
  0x36   :  { %s476_s7 = smov [#allocation7]   ;;  %s477_s9 = smov [#allocation10]  }
  0x37   :  { %s42_s8 = sshll.u32 %s476_s7, 4  ;;  %s64_s10 = sshll.u32 %s477_s9, 4  ;;  %s43_s8 = int_to_ptr.vmem [resolvable:$true] %s42_s8  ;;  %s65_s10 = int_to_ptr.vmem [resolvable:$true] %s64_s10 }
  0x38   :  { %s395_s13 = scalar_lea.hbm %s598_s2, 16 }
  0x39   :  { %p396_p10 = scmp.ne.s32.totalorder %s598_s2, %s395_s13  ;;  %p399_p11 = scmp.lt.u32.totalorder %s395_s13, %s598_s2 }
  0x3b   :  { %p401_p12 = pnand %p399_p11, %p396_p10 }
  0x3d   :  { %404 = shalt.err (!%p401_p12)
}
  0x3e   :  { %s405_s0 = scalar_lea.vmem %s43_s8, 16  ;;  %s409_s17 = scalar_lea.vmem %s43_s8, 32 }
  0x3f   :  { %p406_p13 = scmp.ne.s32.totalorder %s43_s8, %s405_s0  ;;  %p410_p0 = scmp.lt.s32.totalorder %s43_s8, %s43_s8 }
  0x40   :  { %p411_p1 = scmp.lt.s32.totalorder %s409_s17, %s405_s0 }
  0x42   :  { %p412_p2 = por %p411_p1, %p410_p0 }
  0x44   :  { %p413_p3 = pnand %p412_p2, %p406_p13 }
  0x46   :  { %416 = shalt.err (!%p413_p3)
}
  0x47   :  { %45 = dma.hbm_to_vmem [thread:$0]  %s598_s2, 16, %s43_s8, [#allocation6]  }
  0x48   :  { %s417_s23 = scalar_lea.hbm %s600_s4, 16 }
  0x49   :  { %p418_p4 = scmp.ne.s32.totalorder %s600_s4, %s417_s23  ;;  %p421_p5 = scmp.lt.u32.totalorder %s417_s23, %s600_s4 }
  0x4b   :  { %p423_p6 = pnand %p421_p5, %p418_p4 }
  0x4d   :  { %426 = shalt.err (!%p423_p6)
}
  0x4e   :  { %s427_s28 = scalar_lea.vmem %s65_s10, 16  ;;  %s431_s29 = scalar_lea.vmem %s65_s10, 32 }
  0x4f   :  { %p428_p7 = scmp.ne.s32.totalorder %s65_s10, %s427_s28  ;;  %p432_p8 = scmp.lt.s32.totalorder %s65_s10, %s65_s10 }
  0x50   :  { %p433_p9 = scmp.lt.s32.totalorder %s431_s29, %s427_s28 }
  0x52   :  { %p434_p10 = por %p433_p9, %p432_p8 }
  0x54   :  { %p435_p11 = pnand %p434_p10, %p428_p7 }
  0x56   :  { %438 = shalt.err (!%p435_p11)
}
  0x57   :  { %67 = dma.hbm_to_vmem [thread:$0]  %s600_s4, 16, %s65_s10, [#allocation9]  }
  0x58   :  { %461 = dma.done.wait [#allocation3], 256  }
  0x59   :  { %462 = vsyncadd [#allocation3], 4294967040 }
  0x5a   :  { %463 = dma.done.wait [#allocation6], 32  }
  0x5b   :  { %464 = vsyncadd [#allocation6], 4294967264 }
  0x5c   :  { %465 = dma.done.wait [#allocation9], 1040  }
  0x5d   :  { %466 = vsyncadd [#allocation9], 4294966256  ;;  %v84_v0 = vld [vmem:[#allocation2] sm:$0xff]  ;;  %v85_v1 = vld [vmem:[#allocation2 + $0x8] sm:$0xff]  ;;  %v478_v3 = vmov 0.0   ;;  %v92_v4 = vlaneseq  ;;  %vm479_vm1 = vmmov 0  }
  0x5e   :  { %86 = vadd.xlane.f32.xlu0 %v84_v0  ;;  %v317_v2 = vld [vmem:[#allocation8] sm:$0xff]   ;;  %285 = vmatprep.subr.bf16.mxu0 %v478_v3  ;;  %v318_v16 = vld [vmem:[#allocation8 + $0x8] sm:$0xff]   ;;  %v319_v17 = vld [vmem:[#allocation8 + $0x10] sm:$0xff]   ;;  %s480_s4 = smov [#allocation11]  }
  0x5f   :  { %286 = vmatpush3.bf16.msra.mxu0 %v317_v2  ;;  %v93_v5 = vand.u32 127, %v92_v4  ;;  %v320_v18 = vld [vmem:[#allocation8 + $0x18] sm:$0xff]   ;;  %v321_v19 = vld [vmem:[#allocation8 + $0x20] sm:$0xff]   ;;  %301 = vmatprep.mubr.msk.bf16.mxu0 %vm479_vm1, %v478_v3  ;;  %v322_v20 = vld [vmem:[#allocation8 + $0x28] sm:$0xff]   ;;  %s251_s6 = sshll.u32 %s480_s4, 4  ;;  %s252_s6 = int_to_ptr.vmem [resolvable:$true] %s251_s6 }
  0x60   :  { %287 = vmatprep.subr.bf16.mxu0 %v478_v3  ;;  %v323_v21 = vld [vmem:[#allocation8 + $0x30] sm:$0xff]   ;;  %v324_v22 = vld [vmem:[#allocation8 + $0x38] sm:$0xff]   ;;  %v267_v40 = vld [vmem:[#allocation10] ss:$0 sm:$0xff]  ;;  %s439_s7 = scalar_lea.vmem %s252_s6, 256  ;;  %p444_p13 = scmp.lt.s32.totalorder %s252_s6, %s252_s6 }
  0x61   :  { %vm94_vm0 = vcmp.lt.s32.totalorder %v93_v5, 32  ;;  %v265_v31 = vld [vmem:[#allocation5] ss:$0 sm:$0xff]  ;;  %v266_v35 = vld [vmem:[#allocation7] ss:$0 sm:$0xff]  ;;  %p440_p12 = scmp.ne.s32.totalorder %s252_s6, %s439_s7  ;;  %p445_p0 = scmp.lt.s32.totalorder %s439_s7, %s439_s7 }
  0x62   :  { %88 = vadd.xlane.f32.xlu0 %v85_v1 }
  0x63   :  { %288 = vmatpush3.bf16.msra.mxu0 %v318_v16  ;;  %p446_p1 = por %p445_p0, %p444_p13 }
  0x64   :  { %289 = vmatprep.subr.bf16.mxu0 %v478_v3 }
  0x65   :  { %p447_p2 = pnand %p446_p1, %p440_p12 }
  0x67   :  { %290 = vmatpush3.bf16.msra.mxu0 %v319_v17 }
  0x68   :  { %291 = vmatprep.subr.bf16.mxu0 %v478_v3 }
  0x6b   :  { %292 = vmatpush3.bf16.msra.mxu0 %v320_v18 }
  0x6c   :  { %293 = vmatprep.subr.bf16.mxu0 %v478_v3 }
  0x6f   :  { %294 = vmatpush3.bf16.msra.mxu0 %v321_v19 }
  0x70   :  { %295 = vmatprep.subr.bf16.mxu0 %v478_v3 }
  0x73   :  { %296 = vmatpush3.bf16.msra.mxu0 %v322_v20 }
  0x74   :  { %297 = vmatprep.subr.bf16.mxu0 %v478_v3 }
  0x77   :  { %298 = vmatpush3.bf16.msra.mxu0 %v323_v21 }
  0x78   :  { %299 = vmatprep.subr.bf16.mxu0 %v478_v3 }
  0x7b   :  { %300 = vmatpush3.bf16.msra.mxu0 %v324_v22 }
  0xeb   :  { %v87_v6 = vpop.xlane.xlu0 %86 }
  0xec   :  { %v90_v7 = vmul.f32 0.03125, %v87_v6 }
  0xee   :  { %v95_v8 = vsub.f32 %v84_v0, %v90_v7 }
  0xef   :  { %v89_v9 = vpop.xlane.xlu0 %88 }
  0xf0   :  { %v91_v10 = vmul.f32 0.03125, %v89_v9  ;;  %v97_v11 = vsel %vm94_vm0, %v95_v8, 0.0 }
  0xf1   :  { %v99_v12 = vmul.f32 %v97_v11, %v97_v11 }
  0xf2   :  { %v96_v13 = vsub.f32 %v85_v1, %v91_v10 }
  0xf3   :  { %101 = vadd.xlane.f32.xlu1 %v99_v12 }
  0xf4   :  { %v98_v14 = vsel %vm94_vm0, %v96_v13, 0.0 }
  0xf5   :  { %v100_v15 = vmul.f32 %v98_v14, %v98_v14 }
  0xf7   :  { %103 = vadd.xlane.f32.xlu1 %v100_v15 }
 0x180   :  { %v102_v23 = vpop.xlane.xlu1 %101 }
 0x181   :  { %v105_v24 = vmul.f32 0.03125, %v102_v23 }
 0x183   :  { %v107_v25 = vadd.f32 1e-05, %v105_v24 }
 0x184   :  { %v104_v26 = vpop.xlane.xlu1 %103 }
 0x185   :  { %325 = vrsqrt.f32 %v107_v25  ;;  %v106_v27 = vmul.f32 0.03125, %v104_v26 }
 0x187   :  { %v108_v28 = vadd.f32 1e-05, %v106_v27 }
 0x189   :  { %327 = vrsqrt.f32 %v108_v28 }
 0x18f   :  { %v326_v29 = vpop.eup %325 }
 0x190   :  { %v111_v30 = vmul.f32 %v326_v29, %v97_v11 }
 0x192   :  { %v120_v34 = vmul.f32 %v265_v31, %v111_v30 }
 0x193   :  { %v328_v32 = vpop.eup %327 }
 0x194   :  { %v112_v33 = vmul.f32 %v328_v32, %v98_v14  ;;  %v129_v37 = vadd.f32 %v266_v35, %v120_v34 }
 0x196   :  { %v121_v36 = vmul.f32 %v265_v31, %v112_v33 }
 0x198   :  { %v130_v38 = vadd.f32 %v266_v35, %v121_v36 }
 0x19a   :  { %v131_v39 = vpack.c.bf16 %v130_v38, %v129_v37 }
 0x19c   :  { %302 = vmatmul.mubr.bf16.vlgmr.msra.gmra.mrb[0].mxu0 %v131_v39 }
 0x26f   :  { %v237_v41 = vpop.f32.mrb[0].mxu0 }
 0x270   :  { %v238_v42 = vadd.f32 %v267_v40, %v237_v41  ;;  %v303_v43 = vpop.f32.mrb[1].mxu0 }
 0x271   :  { %v240_v44 = vpop.f32.mrb[2].mxu0 }
 0x272   :  { %244 = vst [vmem:[#allocation11] sm:$0xff] %v238_v42  ;;  %v241_v45 = vadd.f32 %v267_v40, %v240_v44  ;;  %v304_v46 = vpop.f32.mrb[3].mxu0 }
 0x274   :  { %245 = vst [vmem:[#allocation11 + $0x8] sm:$0xff] %v241_v45 }
 0x275   :  { %450 = shalt.err (!%p447_p2)
}
 0x276   :  { %s451_s10 = scalar_lea.hbm %s601_s5, 256 }
 0x277   :  { %p452_p3 = scmp.ne.s32.totalorder %s601_s5, %s451_s10  ;;  %p455_p4 = scmp.lt.u32.totalorder %s451_s10, %s601_s5 }
 0x279   :  { %p457_p5 = pnand %p455_p4, %p452_p3 }
 0x27b   :  { %460 = shalt.err (!%p457_p5)
}
 0x27c   :  { %257 = dma.vmem_to_hbm [thread:$0]  %s252_s6, 256, %s601_s5, [#allocation4], %s474_s3, %s474_s3, %s475_s21  }
 0x27d   :  { %467 = dma.done.wait [#allocation4], 256  }
 0x27e   :  { %468 = vsyncadd [#allocation4], 4294967040 }
 0x27f   :  { %261 = vsyncpa [#allocation3], 1 }
 0x280   :  { %262 = vsyncpa [#allocation6], 1 }
 0x281   :  { %263 = vsyncpa [#allocation9], 1 }
 0x282   :  { %264 = vsyncpa [#allocation4], 1 }

</bundles_post_ra>
